<compile_context>
chip_gen: v7x
topology: tpu7x:2x2x1
jax: 0.10.0
libtpu: 0.0.40
codegen_flags: <defaults>
</compile_context>

<pallas_src>
import jax
import jax.numpy as jnp
from jax.experimental import pallas as pl
from jax.experimental.pallas import tpu as pltpu


def linear_kernel(x_ref, w_ref, b_ref, o_ref):
    # x_ref : [TB, D]  batch tile
    # w_ref : [N,  D]  native PyTorch layout, VMEM-resident across the grid
    # b_ref : [1,  N]  VMEM-resident
    # o_ref : [TB, N]
    x = x_ref[...].astype(jnp.float32)
    w = w_ref[...].astype(jnp.float32)
    b = b_ref[...].astype(jnp.float32)

    n = w_ref.shape[0]
    if n == 1:
        # num_labels == 1: skip the MXU entirely.  Elementwise multiply on the
        # VPU, lane reduction on the XLU -> [TB, 1].
        acc = jnp.sum(x * w, axis=-1, keepdims=True)
    else:
        # General case: contract over D with the weight in its native [N, D]
        # layout (the MXU consumes the transposed RHS without materializing it).
        acc = jax.lax.dot_general(
            x, w,
            dimension_numbers=(((1,), (1,)), ((), ())),
            preferred_element_type=jnp.float32,
        )

    o_ref[...] = (acc + b).astype(o_ref.dtype)


def linear_regression_forward(x, weight, bias, *, tb_max=256):
    """x: [B, D], weight: [N, D] (PyTorch layout), bias: [N]."""
    B, D = x.shape
    N, D_w = weight.shape
    assert D == D_w, "weight inner dim must match x feature dim"
    b2 = bias.reshape(1, N)  # 2-D for TPU layout (glue only)

    # Batch tile: full batch if small (single resident block), else a multiple
    # of 8 so Pallas pipelines x tiles / output writebacks across the grid.
    tb = B if B <= tb_max else tb_max
    grid = (pl.cdiv(B, tb),)

    itemsize = jnp.dtype(x.dtype).itemsize
    cost = pl.CostEstimate(
        flops=2 * B * D * N,
        transcendentals=0,
        bytes_accessed=itemsize * (B * D + N * D + N + B * N),
    )

    return pl.pallas_call(
        linear_kernel,
        out_shape=jax.ShapeDtypeStruct((B, N), x.dtype),
        grid_spec=pltpu.PrefetchScalarGridSpec(
            num_scalar_prefetch=0,
            grid=grid,
            in_specs=[
                pl.BlockSpec((tb, D), lambda i: (i, 0)),   # x: batch-tiled
                pl.BlockSpec((N, D), lambda i: (0, 0)),    # weight: resident, native layout
                pl.BlockSpec((1, N), lambda i: (0, 0)),    # bias: resident
            ],
            out_specs=pl.BlockSpec((tb, N), lambda i: (i, 0)),
        ),
        compiler_params=pltpu.CompilerParams(
            dimension_semantics=("parallel",),             # batch axis -> megacore
        ),
        cost_estimate=cost,
    )(x, weight, b2)


if __name__ == "__main__":
    # Small shapes consistent with the module: dim=32, num_labels=1, batch=8.
    batch, dim, num_labels = 8, 32, 1

    key = jax.random.PRNGKey(0)
    kx, kw, kb = jax.random.split(key, 3)

    # Deterministic PyTorch-style init: U(-1/sqrt(dim), 1/sqrt(dim)).
    bound = 1.0 / jnp.sqrt(jnp.float32(dim))
    weight = jax.random.uniform(kw, (num_labels, dim), jnp.float32, -bound, bound)
    bias = jax.random.uniform(kb, (num_labels,), jnp.float32, -bound, bound)

    x = jax.random.normal(kx, (batch, dim), jnp.float32)

    y = linear_regression_forward(x, weight, bias)
    y = jax.block_until_ready(y)

    # Reference check in plain JAX.
    y_ref = x @ weight.T + bias
    assert y.shape == (batch, num_labels)
    assert jnp.allclose(y, y_ref, atol=1e-5, rtol=1e-5)

    print("KERNEL_OK")
</pallas_src>

<mosaic_0001>
module attributes {stable_mosaic.version = 11 : i64} {
  func.func @linear_kernel(%arg0: i32, %arg1: memref<8x32xf32, #tpu.memory_space<vmem>>, %arg2: memref<1x32xf32, #tpu.memory_space<vmem>>, %arg3: memref<1x1xf32, #tpu.memory_space<vmem>>, %arg4: memref<8x1xf32, #tpu.memory_space<vmem>>) attributes {dimension_semantics = [#tpu.dimension_semantics<parallel>], iteration_bounds = array<i64: 1>, scalar_prefetch = 0 : i64, scratch_operands = 0 : i64, tpu.core_type = #tpu.core_type<tc>, window_params = [{transform_indices = @transform_0, window_bounds = array<i64: 8, 32>}, {pipeline_mode = #tpu.pipeline_mode<synchronous>, transform_indices = @transform_1, window_bounds = array<i64: 1, 32>}, {pipeline_mode = #tpu.pipeline_mode<synchronous>, transform_indices = @transform_2, window_bounds = array<i64: 1, 1>}, {transform_indices = @transform_3, window_bounds = array<i64: 8, 1>}]} {
    %c0 = arith.constant 0 : index
    %c0_0 = arith.constant 0 : index
    %0 = vector.load %arg1[%c0, %c0_0] : memref<8x32xf32, #tpu.memory_space<vmem>>, vector<8x32xf32>
    %c0_1 = arith.constant 0 : index
    %c0_2 = arith.constant 0 : index
    %1 = vector.load %arg2[%c0_1, %c0_2] : memref<1x32xf32, #tpu.memory_space<vmem>>, vector<1x32xf32>
    %c0_3 = arith.constant 0 : index
    %c0_4 = arith.constant 0 : index
    %2 = vector.load %arg3[%c0_3, %c0_4] : memref<1x1xf32, #tpu.memory_space<vmem>>, vector<1x1xf32>
    %3 = vector.broadcast %1 : vector<1x32xf32> to vector<8x32xf32>
    %4 = arith.mulf %0, %3 : vector<8x32xf32>
    %cst = arith.constant dense<0.000000e+00> : vector<8xf32>
    %5 = vector.multi_reduction <add>, %4, %cst [1] : vector<8x32xf32> to vector<8xf32>
    %6 = vector.shape_cast %5 : vector<8xf32> to vector<8x1xf32>
    %7 = vector.broadcast %2 : vector<1x1xf32> to vector<8x1xf32>
    %8 = arith.addf %6, %7 : vector<8x1xf32>
    %c0_5 = arith.constant 0 : index
    %c0_6 = arith.constant 0 : index
    %9 = vector.load %arg4[%c0_5, %c0_6] : memref<8x1xf32, #tpu.memory_space<vmem>>, vector<8x1xf32>
    tpu.vector_store %arg4[%c0_5, %c0_6], %8 {strides = array<i32>} : memref<8x1xf32, #tpu.memory_space<vmem>>, vector<8x1xf32>,
    return
  }
  func.func @transform_0(%arg0: i32) -> (i32, i32) {
    %c0_i32 = arith.constant 0 : i32
    %c0_i32_0 = arith.constant 0 : i32
    return %arg0, %c0_i32 : i32, i32
  }
  func.func @transform_1(%arg0: i32) -> (i32, i32) {
    %c0_i32 = arith.constant 0 : i32
    %c0_i32_0 = arith.constant 0 : i32
    %c0_i32_1 = arith.constant 0 : i32
    return %c0_i32, %c0_i32_0 : i32, i32
  }
  func.func @transform_2(%arg0: i32) -> (i32, i32) {
    %c0_i32 = arith.constant 0 : i32
    %c0_i32_0 = arith.constant 0 : i32
    %c0_i32_1 = arith.constant 0 : i32
    return %c0_i32, %c0_i32_0 : i32, i32
  }
  func.func @transform_3(%arg0: i32) -> (i32, i32) {
    %c0_i32 = arith.constant 0 : i32
    %c0_i32_0 = arith.constant 0 : i32
    return %arg0, %c0_i32 : i32, i32
  }
}

</mosaic_0001>

<bundles_post_ra>
// kernel: tpu_custom_call.1
= control target key start
LH: loop header
LB: loop body
LE: loop exit
PB: predicated region body
PF: predicated region fallthrough
CT: control target
= control target key end

     0   :  { %s125_s0 = inlined_call_operand.hbm [shape: f32[8,32], index: 0, kind: input, shape index: {}]   ;;  %s126_s1 = inlined_call_operand.vmem [shape: f32[1,32], index: 1, kind: input, shape index: {}]   ;;  %s127_s2 = inlined_call_operand.<no memory space> [shape: f32[1,1], index: 2, kind: input, shape index: {}]   ;;  %s128_s3 = inlined_call_operand.vmem [shape: f32[8,1], index: 3, kind: output, shape index: {}]  }
   0x1   :  { %v8_v0 = vstv %s127_s2 }
   0x2   :  { %9 = vst [vmem:[#allocation2] sm:$0x1] %v8_v0 }
   0x3   :  { %10 = vsyncpa [#allocation4], 0  ;;  %s83_s14 = smov [#allocation3]   ;;  %s59_s18 = scalar_lea.hbm %s125_s0, 128 }
   0x4   :  { %s17_s15 = sshll.u32 %s83_s14, 4  ;;  %p60_p0 = scmp.ne.s32.totalorder %s125_s0, %s59_s18  ;;  %s18_s15 = int_to_ptr.vmem [resolvable:$true] %s17_s15 }
   0x5   :  { %p63_p1 = scmp.lt.u32.totalorder %s59_s18, %s125_s0 }
   0x7   :  { %p65_p2 = pnand %p63_p1, %p60_p0 }
   0x9   :  { %68 = shalt.err (!%p65_p2)
}
   0xa   :  { %s69_s2 = scalar_lea.vmem %s18_s15, 128  ;;  %p74_p4 = scmp.lt.s32.totalorder %s18_s15, %s18_s15 }
   0xb   :  { %p70_p3 = scmp.ne.s32.totalorder %s18_s15, %s69_s2  ;;  %p75_p5 = scmp.lt.s32.totalorder %s69_s2, %s69_s2 }
   0xd   :  { %p76_p6 = por %p75_p5, %p74_p4 }
   0xf   :  { %p77_p7 = pnand %p76_p6, %p70_p3 }
  0x11   :  { %80 = shalt.err (!%p77_p7)
}
  0x12   :  { %20 = dma.hbm_to_vmem [thread:$0]  %s125_s0, 128, %s18_s15, [#allocation4]  }
  0x13   :  { %81 = dma.done.wait [#allocation4], 128  }
  0x14   :  { %82 = vsyncadd [#allocation4], 4294967168  ;;  %v28_v1 = vld [vmem:[#allocation3] sm:$0xff]  ;;  %v56_v2 = vld [vmem:[%s126_s1] ss:$0 sm:$0xff]  ;;  %vm38_vm0 = vcmask 261120  }
  0x15   :  { %v37_v3 = vmul.f32 %v56_v2, %v28_v1  ;;  %v57_v5 = vld [vmem:[#allocation2] ss:$0 sm:$0xff]  ;;  %vm49_vm1 = vcmask 7168  }
  0x17   :  { %v39_v4 = vsel %vm38_vm0, %v37_v3, 0.0 }
  0x18   :  { %40 = vadd.xlane.f32.xlu0 %v39_v4 }
  0xa5   :  { %v41_v6 = vpop.xlane.xlu0 %40 }
  0xa6   :  { %v48_v7 = vadd.f32 %v57_v5, %v41_v6 }
  0xa8   :  { %50 = vst.msk [vmem:[%s128_s3] sm:$0xff] %vm49_vm1, %v48_v7 }
  0xa9   :  { %55 = vsyncpa [#allocation4], 1 }

</bundles_post_ra>
